<compile_context>
chip_gen: v7x
topology: tpu7x:2x2x1
jax: 0.10.0
libtpu: 0.0.40
codegen_flags: <defaults>
</compile_context>

<pallas_src>
import jax
import jax.numpy as jnp
from jax.experimental import pallas as pl
from jax.experimental.pallas import tpu as pltpu


def _force_pair(v):
    if isinstance(v, tuple):
        assert len(v) == 2
        return (int(v[0]), int(v[1]))
    return (int(v), int(v))


def _round_up(v, m):
    return (v + m - 1) // m * m


def _ceil_div(a, b):
    return -(-a // b)


def _conv_transpose_matmul_kernel(p_ref, w_ref, o_ref):
    """One (phase, batch, M-tile) grid step = one MXU matmul.

    p_ref: (tm, Kp)  bf16  im2col patches (taps folded into the contraction)
    w_ref: (Kp, OC)  bf16  phase sub-kernel (VMEM resident across b/m steps)
    o_ref: (tm, OC)  f32
    """
    o_ref[...] = jnp.dot(p_ref[...], w_ref[...],
                         preferred_element_type=jnp.float32)


def conv_transpose2d(x, weight, stride=1, padding=0):
    """Pallas ConvTranspose2d forward (bias=False).

    x:      (B, IC, H, W)     float32, NCHW (PyTorch layout)
    weight: (IC, OC, KH, KW)  PyTorch ConvTranspose2d weight layout
    Returns (B, OC, OH, OW) float32.
    """
    s_h, s_w = _force_pair(stride)
    p_h, p_w = _force_pair(padding)
    B, IC, H, W = x.shape
    IC2, OC, KH, KW = weight.shape
    assert IC == IC2, "in_channels of x and weight must match"
    assert min(KH - 1 - p_h, KW - 1 - p_w) >= 0, \
        "total amount padded should be positive"
    # TODO(synk): output_padding / dilation / groups (not in the reference
    # module) are unsupported.

    OH = (H - 1) * s_h - 2 * p_h + KH
    OW = (W - 1) * s_w - 2 * p_w + KW

    # --- stride-phase decomposition bookkeeping -----------------------------
    # An output pixel (oh, ow) with phase q_h = (oh + p_h) % s_h only sees
    # kernel taps kh = q_h + th*s_h (th < T_h) and input rows
    # ih = i + m_h(q_h) - th, where oh = o0_h(q_h) + i*s_h.  Same along W.
    # Per phase the op is therefore a plain stride-1 im2col matmul over the
    # ORIGINAL (un-dilated) input — no inserted zeros anywhere.
    T_h, T_w = _ceil_div(KH, s_h), _ceil_div(KW, s_w)     # taps per phase
    N_h, N_w = _ceil_div(OH, s_h), _ceil_div(OW, s_w)     # out rows/cols per phase
    Q = s_h * s_w
    m_h = [-((q - p_h) // s_h) for q in range(s_h)]
    m_w = [-((q - p_w) // s_w) for q in range(s_w)]

    # --- data layout (one-time, static slices; no compute) ------------------
    x_nhwc = jnp.transpose(x, (0, 2, 3, 1)).astype(jnp.bfloat16)   # (B,H,W,IC)
    # Zero-pad so every (phase, tap) shift is an in-range static slice; the
    # padded zeros implement the out-of-range-input masking exactly.
    pt_h, pb_h = T_h - 1, max(0, max(m_h) + N_h - H)
    pt_w, pb_w = T_w - 1, max(0, max(m_w) + N_w - W)
    x_pad = jnp.pad(x_nhwc, ((0, 0), (pt_h, pb_h), (pt_w, pb_w), (0, 0)))

    Kc = T_h * T_w * IC          # contraction = taps-per-phase * in_channels
    M = N_h * N_w                # output pixels per (phase, batch)

    patch_phases, w_phases = [], []
    for qh in range(s_h):
        for qw in range(s_w):
            taps, w_taps = [], []
            for th in range(T_h):
                kh = qh + th * s_h
                hs = pt_h + m_h[qh] - th
                for tw in range(T_w):
                    kw = qw + tw * s_w
                    ws = pt_w + m_w[qw] - tw
                    taps.append(x_pad[:, hs:hs + N_h, ws:ws + N_w, :])
                    if kh < KH and kw < KW:
                        w_taps.append(weight[:, :, kh, kw])      # (IC, OC)
                    else:                    # tap beyond the kernel: zero
                        w_taps.append(jnp.zeros((IC, OC), weight.dtype))
            # (B, N_h, N_w, T, IC) -> (B, M, Kc); k = (th*T_w + tw)*IC + ic
            patch_phases.append(jnp.stack(taps, axis=3).reshape(B, M, Kc))
            w_phases.append(jnp.stack(w_taps, axis=0).reshape(Kc, OC))
    patches = jnp.stack(patch_phases, axis=0)                    # (Q, B, M, Kc)
    w_phase = jnp.stack(w_phases, axis=0)                        # (Q, Kc, OC)

    # Contraction padded only to the bf16 sublane tile (16) — NOT to 128 —
    # so small-channel layers stay mostly real data.  OC is left unpadded.
    Kp = _round_up(Kc, 16)
    # M tile: multiple of 16, capped so the patch block stays <= ~2 MiB.
    tm_cap = max(16, (2 << 20) // (2 * Kp) // 16 * 16)
    tm = min(512, tm_cap, _round_up(M, 16))
    M_pad = _round_up(M, tm)
    n_m = M_pad // tm

    patches = jnp.pad(patches, ((0, 0), (0, 0), (0, M_pad - M), (0, Kp - Kc)))
    patches = patches.astype(jnp.bfloat16)
    w_phase = jnp.pad(w_phase, ((0, 0), (0, Kp - Kc), (0, 0))).astype(jnp.bfloat16)

    flops = 2 * Q * B * M_pad * Kp * OC
    bytes_accessed = 2 * patches.size + 2 * w_phase.size + 4 * Q * B * M_pad * OC

    out = pl.pallas_call(
        _conv_transpose_matmul_kernel,
        out_shape=jax.ShapeDtypeStruct((Q, B, M_pad, OC), jnp.float32),
        grid_spec=pltpu.PrefetchScalarGridSpec(
            num_scalar_prefetch=0,
            grid=(Q, B, n_m),        # phase outermost -> weight DMA'd only Q times
            in_specs=[
                pl.BlockSpec((None, None, tm, Kp), lambda q, b, m: (q, b, m, 0)),
                pl.BlockSpec((None, Kp, OC), lambda q, b, m: (q, 0, 0)),
            ],
            out_specs=pl.BlockSpec((None, None, tm, OC),
                                   lambda q, b, m: (q, b, m, 0)),
        ),
        compiler_params=pltpu.CompilerParams(
            dimension_semantics=("arbitrary", "parallel", "parallel")),
        cost_estimate=pl.CostEstimate(
            flops=flops, transcendentals=0, bytes_accessed=bytes_accessed),
    )(patches, w_phase)
    # TODO(synk): for large IC/OC (real DCGAN layers) add an OC (N) grid axis
    # and, for very large Kp, a K grid axis with a VMEM scratch accumulator
    # (pl.when init/finalize), to bound per-step VMEM on v7x (64 MiB physical)
    # and single-buffer the resident weight block.

    # --- un-interleave the phases back into the output image ----------------
    out = out[:, :, :M, :].reshape(s_h, s_w, B, N_h, N_w, OC)
    canvas = jnp.zeros((B, N_h * s_h, N_w * s_w, OC), jnp.float32)
    for qh in range(s_h):
        oh0 = (qh - p_h) % s_h
        for qw in range(s_w):
            ow0 = (qw - p_w) % s_w
            canvas = canvas.at[:, oh0::s_h, ow0::s_w, :].set(out[qh, qw])
    return jnp.transpose(canvas[:, :OH, :OW, :], (0, 3, 1, 2))     # NCHW


def reference_conv_transpose2d(x, weight, stride=1, padding=0):
    """Pure-JAX port of the PyTorch reference (fractional stride + pad + conv)."""
    s_h, s_w = _force_pair(stride)
    p_h, p_w = _force_pair(padding)
    B, IC, H, W = x.shape
    _, OC, KH, KW = weight.shape
    H_fs = H + (s_h - 1) * (H - 1)
    W_fs = W + (s_w - 1) * (W - 1)
    x_fs = jnp.zeros((B, IC, H_fs, W_fs), x.dtype).at[:, :, ::s_h, ::s_w].set(x)
    x_mod = jnp.pad(x_fs, ((0, 0), (0, 0),
                           (KH - 1 - p_h, KH - 1 - p_h),
                           (KW - 1 - p_w, KW - 1 - p_w)))
    w_mod = jnp.transpose(jnp.flip(weight, axis=(2, 3)), (1, 0, 2, 3))  # OIHW
    return jax.lax.conv_general_dilated(
        x_mod, w_mod, window_strides=(1, 1), padding="VALID",
        dimension_numbers=("NCHW", "OIHW", "NCHW"),
        precision=jax.lax.Precision.HIGHEST)


if __name__ == "__main__":
    key = jax.random.PRNGKey(0)
    kx1, kw1, kx2, kw2 = jax.random.split(key, 4)

    # Case 1: DCGAN-style upsample — ConvTranspose2d(4, 8, k=4, stride=2, pad=1)
    B, IC, OC, H, W, KH, KW = 2, 4, 8, 16, 16, 4, 4
    x = jax.random.normal(kx1, (B, IC, H, W), dtype=jnp.float32)
    sf = 1.0 / (OC * KH * KW) ** 0.5                 # module init: U(-sf, sf)
    w = jax.random.uniform(kw1, (IC, OC, KH, KW), jnp.float32, -sf, sf)

    fwd = jax.jit(lambda a, b: conv_transpose2d(a, b, stride=2, padding=1))
    out = jax.block_until_ready(fwd(x, w))
    ref = reference_conv_transpose2d(x, w, stride=2, padding=1)
    assert out.shape == ref.shape == (B, OC, 32, 32), (out.shape, ref.shape)
    # bf16 operands (f32 accumulation) vs the f32 reference: loose tolerance.
    assert jnp.allclose(out, ref, atol=5e-2, rtol=5e-2), "mismatch vs f32 reference"
    # Tighter check vs the reference fed bf16-rounded operands (isolates the
    # bf16 operand rounding from the MXU math itself).
    ref_bf = reference_conv_transpose2d(
        x.astype(jnp.bfloat16).astype(jnp.float32),
        w.astype(jnp.bfloat16).astype(jnp.float32), stride=2, padding=1)
    assert jnp.allclose(out, ref_bf, atol=1e-3, rtol=1e-3), "mismatch vs bf16 reference"

    # Case 2: irregular shapes — asymmetric stride/kernel/padding, odd channels.
    x2 = jax.random.normal(kx2, (2, 3, 5, 4), dtype=jnp.float32)
    w2 = jax.random.uniform(kw2, (3, 5, 3, 5), jnp.float32, -0.2, 0.2)
    fwd2 = jax.jit(lambda a, b: conv_transpose2d(a, b, stride=(2, 3), padding=(1, 2)))
    out2 = jax.block_until_ready(fwd2(x2, w2))
    ref2 = reference_conv_transpose2d(x2, w2, stride=(2, 3), padding=(1, 2))
    assert out2.shape == ref2.shape == (2, 5, 9, 10), (out2.shape, ref2.shape)
    assert jnp.allclose(out2, ref2, atol=5e-2, rtol=5e-2), "mismatch (irregular case)"

    print("KERNEL_OK")
</pallas_src>

<mosaic_0001>
module attributes {stable_mosaic.version = 11 : i64} {
  func.func @_conv_transpose_matmul_kernel(%arg0: i32, %arg1: i32, %arg2: i32, %arg3: memref<1x1x256x16xbf16, #tpu.memory_space<vmem>>, %arg4: memref<1x16x8xbf16, #tpu.memory_space<vmem>>, %arg5: memref<1x1x256x8xf32, #tpu.memory_space<vmem>>) attributes {dimension_semantics = [#tpu.dimension_semantics<arbitrary>, #tpu.dimension_semantics<parallel>, #tpu.dimension_semantics<parallel>], iteration_bounds = array<i64: 4, 2, 1>, scalar_prefetch = 0 : i64, scratch_operands = 0 : i64, tpu.core_type = #tpu.core_type<tc>, window_params = [{transform_indices = @transform_0, window_bounds = array<i64: 1, 1, 256, 16>}, {transform_indices = @transform_1, window_bounds = array<i64: 1, 16, 8>}, {transform_indices = @transform_2, window_bounds = array<i64: 1, 1, 256, 8>}]} {
    %c0 = arith.constant 0 : index
    %c0_0 = arith.constant 0 : index
    %c0_1 = arith.constant 0 : index
    %c0_2 = arith.constant 0 : index
    %0 = vector.load %arg3[%c0, %c0_0, %c0_1, %c0_2] : memref<1x1x256x16xbf16, #tpu.memory_space<vmem>>, vector<1x1x256x16xbf16>
    %1 = vector.shape_cast %0 : vector<1x1x256x16xbf16> to vector<256x16xbf16>
    %c0_3 = arith.constant 0 : index
    %c0_4 = arith.constant 0 : index
    %c0_5 = arith.constant 0 : index
    %2 = vector.load %arg4[%c0_3, %c0_4, %c0_5] : memref<1x16x8xbf16, #tpu.memory_space<vmem>>, vector<1x16x8xbf16>
    %3 = vector.shape_cast %2 : vector<1x16x8xbf16> to vector<16x8xbf16>
    %cst = arith.constant dense<0.000000e+00> : vector<256x8xf32>
    %4 = tpu.matmul %1, %3, %cst {dimension_numbers = #tpu.dot_dimension_numbers<[1], [0], [0], [1], [0, 0, 1, 1], [], []>} : vector<256x16xbf16>, vector<16x8xbf16>, vector<256x8xf32> -> vector<256x8xf32>
    %c0_6 = arith.constant 0 : index
    %c0_7 = arith.constant 0 : index
    %c0_8 = arith.constant 0 : index
    %c0_9 = arith.constant 0 : index
    %5 = vector.load %arg5[%c0_6, %c0_7, %c0_8, %c0_9] : memref<1x1x256x8xf32, #tpu.memory_space<vmem>>, vector<1x1x256x8xf32>
    %6 = vector.shape_cast %5 : vector<1x1x256x8xf32> to vector<256x8xf32>
    %7 = vector.shape_cast %4 : vector<256x8xf32> to vector<1x1x256x8xf32>
    tpu.vector_store %arg5[%c0_6, %c0_7, %c0_8, %c0_9], %7 {strides = array<i32>} : memref<1x1x256x8xf32, #tpu.memory_space<vmem>>, vector<1x1x256x8xf32>,
    return
  }
  func.func @transform_0(%arg0: i32, %arg1: i32, %arg2: i32) -> (i32, i32, i32, i32) {
    %c0_i32 = arith.constant 0 : i32
    %c0_i32_0 = arith.constant 0 : i32
    return %arg0, %arg1, %arg2, %c0_i32 : i32, i32, i32, i32
  }
  func.func @transform_1(%arg0: i32, %arg1: i32, %arg2: i32) -> (i32, i32, i32) {
    %c0_i32 = arith.constant 0 : i32
    %c0_i32_0 = arith.constant 0 : i32
    %c0_i32_1 = arith.constant 0 : i32
    return %arg0, %c0_i32, %c0_i32_0 : i32, i32, i32
  }
  func.func @transform_2(%arg0: i32, %arg1: i32, %arg2: i32) -> (i32, i32, i32, i32) {
    %c0_i32 = arith.constant 0 : i32
    %c0_i32_0 = arith.constant 0 : i32
    return %arg0, %arg1, %arg2, %c0_i32 : i32, i32, i32, i32
  }
}

</mosaic_0001>

<bundles_post_ra>
// kernel: _lambda_.1
= control target key start
LH: loop header
LB: loop body
LE: loop exit
PB: predicated region body
PF: predicated region fallthrough
CT: control target
= control target key end

     0   :  { %s939_s9 = smov 0   ;;  %s941_s10 = smov 0   ;;  %s1097_s0 = inlined_call_operand.vmem [shape: bf16[4,2,256,16], index: 0, kind: input, shape index: {}]   ;;  %s1098_s1 = inlined_call_operand.vmem [shape: bf16[4,16,8], index: 1, kind: input, shape index: {}]   ;;  %s1099_s2 = inlined_call_operand.vmem [shape: f32[4,2,256,8], index: 2, kind: output, shape index: {}]  }
   0x1   :  { %s943_s11 = smov 0   ;;  %s945_s12 = smov 0  }
   0x2   :  { %s947_s13 = smov 0  }
   0x3 LB: > { %s27_s14 = sadd.s32 1, %s914_s11  ;;  %s31_s15 = sadd.s32 1, %s918_s12  ;;  %s922_s13 = sphi %s947_s13, %s12_s13   ;;  %s918_s12 = sphi %s945_s12, %s1103_s12   ;;  %s914_s11 = sphi %s943_s11, %s1102_s11   ;;  %s910_s10 = sphi %s941_s10, %s1101_s10   ;;  %s906_s9 = sphi %s939_s9, %s1100_s9  }
   0x4   : > { %p29_p0 = scmp.ge.s32.totalorder %s27_s14, 2  ;;  %p729_p1 = scmp.ge.s32.totalorder %s922_s13, 1 }
   0x5   : > { %p158_p2 = scmp.lt.s32.totalorder %s922_s13, 9 }
   0x6   : > { %s1105_s14 = smov (%p29_p0, %s27_s14), 0  ;;  %s1107_s15 = smov (!%p29_p0, %s31_s15), %s918_s12 }
   0x7   : > { %p159_p3 = pnand %p729_p1, %p158_p2  ;;  %p33_p4 = scmp.ge.s32.totalorder %s1107_s15, 4 }
   0x8   : > { %p202_p5 = scmp.lt.s32.totalorder (!%p159_p3), %s910_s10, 3  ;;  %p204_p6 = scmp.lt.s32.totalorder (!%p159_p3), %s906_s9, 1  ;;  %vm355_vm0 = vcmask (!%p159_p3), 130048   ;;  %vm565_vm1 = vcmask (!%p159_p3), 64512  }
   0x9   : > { %s1109_s15 = smov (%p33_p4, %s1107_s15), 0  ;;  %162 = sbr.rel (%p159_p3) target bundleno = 265 (0x109), region = 28 }
  0x10   : > { %s1111_s10 = smov (!%p202_p5, %s910_s10), 3  ;;  %s1113_s9 = smov (!%p204_p6, %s906_s9), 1 }
  0x11   : > { %s731_s16 = sshll.u32 %s1111_s10, 6  ;;  %s773_s17 = sshll.u32 %s1111_s10, 3 }
  0x12   : > { %s730_s18 = sshll.u32 %s1113_s9, 5  ;;  %s219_s21 = scalar_lea.vmem %s1098_s1, %s773_s17 }
  0x13   : > { %s972_s22 = sadd.s32 %s731_s16, %s730_s18  ;;  %v867_v0 = vld [vmem:[%s219_s21] sm:$0xff]  }
  0x14   : > { %s732_s23 = sshll.u32 %s972_s22, 2  ;;  %791 = vmatprep.subr.bf16.mxu0 %v867_v0  ;;  %825 = vmatprep.subr.bf16.mxu1 %v867_v0  ;;  %s737_s27 = sshll.u32 %s972_s22, 3 }
  0x15   : > { %s978_s26 = scalar_lea.vmem %s1097_s0, %s732_s23  ;;  %792 = vmatpush3.bf16.msra.mxu0 %v867_v0  ;;  %826 = vmatpush3.bf16.msra.mxu1 %v867_v0  ;;  %s1016_s30 = scalar_lea.vmem %s1099_s2, %s737_s27 }
  0x16   : > { %v868_v1 = vld [vmem:[%s978_s26] sm:$0xff]   ;;  %v870_v3 = vld [vmem:[%s978_s26 + $0x8] sm:$0xff]   ;;  %v872_v5 = vld [vmem:[%s978_s26 + $0x10] sm:$0xff]  }
  0x17   : > { %v869_v2 = vld [vmem:[%s978_s26 + $0x40] sm:$0xff]   ;;  %793 = vmatprep.mubr.msk.bf16.mxu0 %vm355_vm0, %v868_v1  ;;  %v871_v4 = vld [vmem:[%s978_s26 + $0x48] sm:$0xff]   ;;  %v873_v6 = vld [vmem:[%s978_s26 + $0x50] sm:$0xff]  }
  0x18   : > { %809 = vmatprep.mubr.msk.bf16.mxu1 %vm355_vm0, %v869_v2  ;;  %794 = vmatmul.mubr.msk.bf16.vlgmr.msra.gmra.mrb[0].mxu0 %vm355_vm0, %v870_v3  ;;  %v874_v7 = vld [vmem:[%s978_s26 + $0x18] sm:$0xff]   ;;  %v876_v9 = vld [vmem:[%s978_s26 + $0x20] sm:$0xff]   ;;  %v878_v11 = vld [vmem:[%s978_s26 + $0x28] sm:$0xff]  }
  0x19   : > { %810 = vmatmul.mubr.msk.bf16.vlgmr.msra.gmra.mrb[0].mxu1 %vm355_vm0, %v871_v4  ;;  %797 = vmatprep.mubr.msk.bf16.mxu0 %vm355_vm0, %v872_v5  ;;  %v875_v8 = vld [vmem:[%s978_s26 + $0x58] sm:$0xff]   ;;  %v877_v10 = vld [vmem:[%s978_s26 + $0x60] sm:$0xff]   ;;  %v879_v12 = vld [vmem:[%s978_s26 + $0x68] sm:$0xff]  }
  0x1a   : > { %813 = vmatprep.mubr.msk.bf16.mxu1 %vm355_vm0, %v873_v6  ;;  %v880_v13 = vld [vmem:[%s978_s26 + $0x30] sm:$0xff]   ;;  %v882_v15 = vld [vmem:[%s978_s26 + $0x38] sm:$0xff]  }
  0x1b   : > { %v881_v14 = vld [vmem:[%s978_s26 + $0x70] sm:$0xff]   ;;  %v883_v16 = vld [vmem:[%s978_s26 + $0x78] sm:$0xff]  }
  0x20   : > { %798 = vmatmul.mubr.msk.bf16.gmra.mrb[4].mxu0 %vm355_vm0, %v874_v7 }
  0x21   : > { %814 = vmatmul.mubr.msk.bf16.gmra.mrb[4].mxu1 %vm355_vm0, %v875_v8  ;;  %801 = vmatprep.mubr.msk.bf16.mxu0 %vm355_vm0, %v876_v9 }
  0x22   : > { %817 = vmatprep.mubr.msk.bf16.mxu1 %vm355_vm0, %v877_v10 }
  0x28   : > { %802 = vmatmul.mubr.msk.bf16.gmra.mrb[8].mxu0 %vm355_vm0, %v878_v11 }
  0x29   : > { %818 = vmatmul.mubr.msk.bf16.gmra.mrb[8].mxu1 %vm355_vm0, %v879_v12  ;;  %805 = vmatprep.mubr.msk.bf16.mxu0 %vm355_vm0, %v880_v13 }
  0x2a   : > { %821 = vmatprep.mubr.msk.bf16.mxu1 %vm355_vm0, %v881_v14 }
  0x30   : > { %806 = vmatmul.mubr.msk.bf16.gmra.mrb[12].mxu0 %vm355_vm0, %v882_v15 }
  0x31   : > { %822 = vmatmul.mubr.msk.bf16.gmra.mrb[12].mxu1 %vm355_vm0, %v883_v16 }
  0xeb   : > { %v795_v17 = vpop.f32.mrb[0].mxu0 }
  0xec   : > { %568 = vst.msk [vmem:[%s1016_s30 + $0x10] sm:$0xff] %vm565_vm1, %v795_v17  ;;  %v811_v18 = vpop.f32.mrb[0].mxu1  ;;  %v438_v19 = vpop.f32.mrb[1].mxu0 }
  0xed   : > { %584 = vst.msk [vmem:[%s1016_s30 + $0x90] sm:$0xff] %vm565_vm1, %v811_v18  ;;  %566 = vst.msk [vmem:[%s1016_s30] sm:$0xff] %vm565_vm1, %v438_v19  ;;  %v502_v20 = vpop.f32.mrb[1].mxu1  ;;  %v796_v21 = vpop.f32.mrb[2].mxu0 }
  0xee   : > { %582 = vst.msk [vmem:[%s1016_s30 + $0x80] sm:$0xff] %vm565_vm1, %v502_v20  ;;  %569 = vst.msk [vmem:[%s1016_s30 + $0x18] sm:$0xff] %vm565_vm1, %v796_v21  ;;  %v812_v22 = vpop.f32.mrb[2].mxu1  ;;  %v441_v23 = vpop.f32.mrb[3].mxu0 }
  0xef   : > { %585 = vst.msk [vmem:[%s1016_s30 + $0x98] sm:$0xff] %vm565_vm1, %v812_v22  ;;  %567 = vst.msk [vmem:[%s1016_s30 + $0x8] sm:$0xff] %vm565_vm1, %v441_v23  ;;  %v505_v24 = vpop.f32.mrb[3].mxu1 }
  0xf0   : > { %583 = vst.msk [vmem:[%s1016_s30 + $0x88] sm:$0xff] %vm565_vm1, %v505_v24 }
  0xf3   : > { %v799_v25 = vpop.f32.mrb[4].mxu0 }
  0xf4   : > { %572 = vst.msk [vmem:[%s1016_s30 + $0x30] sm:$0xff] %vm565_vm1, %v799_v25  ;;  %v815_v26 = vpop.f32.mrb[4].mxu1  ;;  %v454_v27 = vpop.f32.mrb[5].mxu0 }
  0xf5   : > { %588 = vst.msk [vmem:[%s1016_s30 + $0xb0] sm:$0xff] %vm565_vm1, %v815_v26  ;;  %570 = vst.msk [vmem:[%s1016_s30 + $0x20] sm:$0xff] %vm565_vm1, %v454_v27  ;;  %v518_v28 = vpop.f32.mrb[5].mxu1  ;;  %v800_v29 = vpop.f32.mrb[6].mxu0 }
  0xf6   : > { %586 = vst.msk [vmem:[%s1016_s30 + $0xa0] sm:$0xff] %vm565_vm1, %v518_v28  ;;  %573 = vst.msk [vmem:[%s1016_s30 + $0x38] sm:$0xff] %vm565_vm1, %v800_v29  ;;  %v816_v30 = vpop.f32.mrb[6].mxu1  ;;  %v457_v31 = vpop.f32.mrb[7].mxu0 }
  0xf7   : > { %589 = vst.msk [vmem:[%s1016_s30 + $0xb8] sm:$0xff] %vm565_vm1, %v816_v30  ;;  %571 = vst.msk [vmem:[%s1016_s30 + $0x28] sm:$0xff] %vm565_vm1, %v457_v31  ;;  %v521_v32 = vpop.f32.mrb[7].mxu1 }
  0xf8   : > { %587 = vst.msk [vmem:[%s1016_s30 + $0xa8] sm:$0xff] %vm565_vm1, %v521_v32 }
  0xfb   : > { %v803_v33 = vpop.f32.mrb[8].mxu0 }
  0xfc   : > { %576 = vst.msk [vmem:[%s1016_s30 + $0x50] sm:$0xff] %vm565_vm1, %v803_v33  ;;  %v819_v34 = vpop.f32.mrb[8].mxu1  ;;  %v470_v35 = vpop.f32.mrb[9].mxu0 }
  0xfd   : > { %592 = vst.msk [vmem:[%s1016_s30 + $0xd0] sm:$0xff] %vm565_vm1, %v819_v34  ;;  %574 = vst.msk [vmem:[%s1016_s30 + $0x40] sm:$0xff] %vm565_vm1, %v470_v35  ;;  %v534_v36 = vpop.f32.mrb[9].mxu1  ;;  %v804_v37 = vpop.f32.mrb[10].mxu0 }
  0xfe   : > { %590 = vst.msk [vmem:[%s1016_s30 + $0xc0] sm:$0xff] %vm565_vm1, %v534_v36  ;;  %577 = vst.msk [vmem:[%s1016_s30 + $0x58] sm:$0xff] %vm565_vm1, %v804_v37  ;;  %v820_v38 = vpop.f32.mrb[10].mxu1  ;;  %v473_v39 = vpop.f32.mrb[11].mxu0 }
  0xff   : > { %593 = vst.msk [vmem:[%s1016_s30 + $0xd8] sm:$0xff] %vm565_vm1, %v820_v38  ;;  %575 = vst.msk [vmem:[%s1016_s30 + $0x48] sm:$0xff] %vm565_vm1, %v473_v39  ;;  %v537_v40 = vpop.f32.mrb[11].mxu1 }
 0x100   : > { %591 = vst.msk [vmem:[%s1016_s30 + $0xc8] sm:$0xff] %vm565_vm1, %v537_v40 }
 0x103   : > { %v807_v41 = vpop.f32.mrb[12].mxu0 }
 0x104   : > { %580 = vst.msk [vmem:[%s1016_s30 + $0x70] sm:$0xff] %vm565_vm1, %v807_v41  ;;  %v823_v42 = vpop.f32.mrb[12].mxu1  ;;  %v486_v43 = vpop.f32.mrb[13].mxu0 }
 0x105   : > { %596 = vst.msk [vmem:[%s1016_s30 + $0xf0] sm:$0xff] %vm565_vm1, %v823_v42  ;;  %578 = vst.msk [vmem:[%s1016_s30 + $0x60] sm:$0xff] %vm565_vm1, %v486_v43  ;;  %v550_v44 = vpop.f32.mrb[13].mxu1  ;;  %v808_v45 = vpop.f32.mrb[14].mxu0 }
 0x106   : > { %594 = vst.msk [vmem:[%s1016_s30 + $0xe0] sm:$0xff] %vm565_vm1, %v550_v44  ;;  %581 = vst.msk [vmem:[%s1016_s30 + $0x78] sm:$0xff] %vm565_vm1, %v808_v45  ;;  %v824_v46 = vpop.f32.mrb[14].mxu1  ;;  %v489_v47 = vpop.f32.mrb[15].mxu0 }
 0x107   : > { %597 = vst.msk [vmem:[%s1016_s30 + $0xf8] sm:$0xff] %vm565_vm1, %v824_v46  ;;  %579 = vst.msk [vmem:[%s1016_s30 + $0x68] sm:$0xff] %vm565_vm1, %v489_v47  ;;  %v553_v48 = vpop.f32.mrb[15].mxu1 }
 0x108   : > { %595 = vst.msk [vmem:[%s1016_s30 + $0xe8] sm:$0xff] %vm565_vm1, %v553_v48 }
 0x109 PF: > { %s12_s13 = sadd.s32 1, %s922_s13   ;;  %s1100_s9 = smov %s914_s11 }
 0x10a   : > { %p9_p7 = scmp.ge.s32.totalorder %s12_s13, 10   ;;  %s1101_s10 = smov %s918_s12 }
 0x10b   : > { %s1102_s11 = smov %s1105_s14  ;;  %s1103_s12 = smov %s1109_s15 }
 0x10c   :  { %11 = sbr.rel (!%p9_p7) target bundleno = 3 (0x3), region = 61 }

</bundles_post_ra>
